<compile_context>
chip_gen: v5e
topology: v5e:2x2
jax: 0.10.0
libtpu: 0.0.40
codegen_flags: <defaults>
</compile_context>

<pallas_src>
import jax
import jax.numpy as jnp
from jax.experimental import pallas as pl
from jax.experimental.pallas import tpu as pltpu


# ---------------------------------------------------------------------------
# Kernels
# ---------------------------------------------------------------------------
def _concat_kernel_3d(feat_ref, cap_ref, out_ref):
    # feat_ref: (TB, E) ; cap_ref: (TB, TS, E) ; out_ref: (TB, TS, 2E)
    TB, TS, E = cap_ref.shape
    feat = feat_ref[...]
    expanded = jnp.broadcast_to(feat[:, None, :], (TB, TS, E))
    if E % 128 == 0:
        # Lane-aligned halves: two direct stores, no concatenated temporary.
        out_ref[:, :, :E] = expanded
        out_ref[:, :, E:] = cap_ref[...]
    else:
        # Unaligned E: build the slab once and do a single store.
        out_ref[...] = jnp.concatenate([expanded, cap_ref[...]], axis=-1)


def _concat_kernel_flat(feat_ref, cap_ref, out_ref):
    # feat_ref: (TB, E) ; cap_ref: (TB, TS, E) ; out_ref: (TB, TS*2E) lane-dense.
    TB, TS, E = cap_ref.shape
    feat = feat_ref[...]
    expanded = jnp.broadcast_to(feat[:, None, :], (TB, TS, E))
    slab = jnp.concatenate([expanded, cap_ref[...]], axis=-1)   # (TB, TS, 2E)
    # Merge the minor dims (XLU relayout) so the store is a wide unmasked vst
    # instead of masked sub-128-lane partial stores.
    out_ref[...] = slab.reshape(TB, TS * 2 * E)


# ---------------------------------------------------------------------------
# Wrapper
# ---------------------------------------------------------------------------
def _default_target_bytes():
    """Per-step HBM traffic target; bigger on faster-HBM / smaller-VMEM chips."""
    try:
        info = pltpu.get_tpu_info()
        vmem = int(getattr(info, "vmem_capacity_bytes", 128 << 20))
        # 64 MiB physical VMEM => v7x-class chip with ~3.2 TB/s HBM: fixed per-step
        # overhead is proportionally larger, so use bigger blocks.
        return (12 << 20) if vmem <= (64 << 20) else (8 << 20)
    except Exception:
        return 8 << 20


def concatenate_features_and_sequences(features, embedded_captions,
                                       *, target_block_bytes=None):
    """Pallas equivalent of ConcatenateFeaturesAndSequences.forward.

    features:          (N, E)
    embedded_captions: (N, S, E)
    returns:           (N, S, 2*E)
    """
    N, E = features.shape
    N2, S, E2 = embedded_captions.shape
    assert N == N2, "batch dims must match"
    assert E == E2, "feature dim must match caption embedding dim"
    assert features.dtype == embedded_captions.dtype

    dtype = features.dtype
    itemsize = jnp.dtype(dtype).itemsize
    if target_block_bytes is None:
        target_block_bytes = _default_target_bytes()

    # ---- tile sizing (pure HBM-roofline copy: size blocks to the traffic target)
    per_pos_bytes = 3 * E * itemsize                 # cap read + out write / (row, s)
    per_row_bytes = S * per_pos_bytes + E * itemsize # + feature read / row
    if N * per_row_bytes <= target_block_bytes:
        TB, TS = N, S                                # whole problem fits one block
    elif N >= 8 and 8 * per_row_bytes <= target_block_bytes:
        # Tile batch only; TB a multiple of 8 (feature-block sublane constraint).
        TB = min(N, max(8, (target_block_bytes // per_row_bytes) // 8 * 8))
        TS = S
    else:
        # Rows too big for the budget: smallest legal row block, tile the S axis.
        TB = N if N < 8 else 8
        ts_budget = target_block_bytes // max(1, TB * per_pos_bytes)
        TS = max(8, (ts_budget // 8) * 8)            # TS multiple of 8
        if TS >= S:
            TS = S
    grid = (pl.cdiv(N, TB), pl.cdiv(S, TS))          # S axis last

    two_e = 2 * E
    # Lane-dense flat output only pays off (and is a legal block) when 2E itself is
    # not lane-aligned but a whole (TS, 2E) row-slab is a multiple of 128 lanes.
    flat_possible = (two_e % 128 != 0) and ((TS * two_e) % 128 == 0)

    # Double-buffered VMEM footprint of one grid step (+ headroom for relayout temps).
    block_bytes = (TB * E + TB * TS * E + TB * TS * two_e) * itemsize
    vmem_limit = int(min(48 << 20, max(32 << 20, 4 * block_bytes)))

    cost = pl.CostEstimate(flops=0, transcendentals=0,
                           bytes_accessed=(3 * N * S * E + N * E) * itemsize)

    feat_spec = pl.BlockSpec((TB, E), lambda i, j: (i, 0))      # resident across S
    cap_spec = pl.BlockSpec((TB, TS, E), lambda i, j: (i, j, 0))

    def run(use_flat, semantics):
        if use_flat:
            kernel = _concat_kernel_flat
            out_shape = jax.ShapeDtypeStruct((N, S * two_e), dtype)
            out_spec = pl.BlockSpec((TB, TS * two_e), lambda i, j: (i, j))
        else:
            kernel = _concat_kernel_3d
            out_shape = jax.ShapeDtypeStruct((N, S, two_e), dtype)
            out_spec = pl.BlockSpec((TB, TS, two_e), lambda i, j: (i, j, 0))
        out = pl.pallas_call(
            kernel,
            out_shape=out_shape,
            grid_spec=pltpu.PrefetchScalarGridSpec(
                num_scalar_prefetch=0,
                grid=grid,
                in_specs=[feat_spec, cap_spec],
                out_specs=out_spec),
            compiler_params=pltpu.CompilerParams(
                dimension_semantics=semantics,
                vmem_limit_bytes=vmem_limit),
            cost_estimate=cost,
        )(features, embedded_captions)
        out = jax.block_until_ready(out)             # surface compile/run errors here
        if use_flat:
            out = out.reshape(N, S, two_e)           # free (row-major) reshape
        return out

    # Preferred config first (CORE_PARALLEL actually uses both v7x TensorCores;
    # flat layout gives unmasked lane-dense stores); fall back gracefully.
    semantics_options = ((pltpu.CORE_PARALLEL, pltpu.ARBITRARY),
                         ("parallel", "arbitrary"))
    layout_options = (True, False) if flat_possible else (False,)
    last_err = None
    for use_flat in layout_options:
        for semantics in semantics_options:
            try:
                return run(use_flat, semantics)
            except Exception as err:                 # unsupported lowering / semantics
                last_err = err
    raise last_err


# ---------------------------------------------------------------------------
# Self-test
# ---------------------------------------------------------------------------
if __name__ == "__main__":
    def reference(features, caps):
        n, s, e = caps.shape
        return jnp.concatenate(
            [jnp.broadcast_to(features[:, None, :], (n, s, e)), caps], axis=2)

    key = jax.random.PRNGKey(0)
    k1, k2, k3, k4 = jax.random.split(key, 4)

    # Case 1: module-consistent small shapes (N=2, seq_len=8, embed_size=32).
    f1 = jax.random.normal(k1, (2, 32), dtype=jnp.float32)
    c1 = jax.random.normal(k2, (2, 8, 32), dtype=jnp.float32)
    o1 = jax.block_until_ready(concatenate_features_and_sequences(f1, c1))
    assert o1.shape == (2, 8, 64)
    assert o1.dtype == f1.dtype
    assert jnp.array_equal(o1, reference(f1, c1))

    # Case 2: force tiny blocks so the grid has multiple batch/seq blocks and a
    # partial batch tail (N % TB != 0) -> validates tail-block masking.
    f2 = jax.random.normal(k3, (10, 32), dtype=jnp.float32)
    c2 = jax.random.normal(k4, (10, 24, 32), dtype=jnp.float32)
    o2 = jax.block_until_ready(
        concatenate_features_and_sequences(f2, c2, target_block_bytes=4096))
    assert o2.shape == (10, 24, 64)
    assert jnp.array_equal(o2, reference(f2, c2))

    print("KERNEL_OK")
</pallas_src>

<mosaic_0001>
module attributes {stable_mosaic.version = 11 : i64} {
  func.func @_concat_kernel_flat(%arg0: i32, %arg1: i32, %arg2: memref<2x32xf32, #tpu.memory_space<vmem>>, %arg3: memref<2x8x32xf32, #tpu.memory_space<vmem>>, %arg4: memref<2x512xf32, #tpu.memory_space<vmem>>) attributes {dimension_semantics = [#tpu.dimension_semantics<core_parallel>, #tpu.dimension_semantics<arbitrary>], iteration_bounds = array<i64: 1, 1>, scalar_prefetch = 0 : i64, scratch_operands = 0 : i64, tpu.core_type = #tpu.core_type<tc>, window_params = [{transform_indices = @transform_0, window_bounds = array<i64: 2, 32>}, {transform_indices = @transform_1, window_bounds = array<i64: 2, 8, 32>}, {transform_indices = @transform_2, window_bounds = array<i64: 2, 512>}]} {
    %c0 = arith.constant 0 : index
    %c0_0 = arith.constant 0 : index
    %0 = vector.load %arg2[%c0, %c0_0] : memref<2x32xf32, #tpu.memory_space<vmem>>, vector<2x32xf32>
    %1 = vector.shape_cast %0 : vector<2x32xf32> to vector<2x1x32xf32>
    %2 = vector.shape_cast %1 : vector<2x1x32xf32> to vector<2x1x32xf32>
    %3 = vector.broadcast %2 : vector<2x1x32xf32> to vector<2x8x32xf32>
    %c0_1 = arith.constant 0 : index
    %c0_2 = arith.constant 0 : index
    %c0_3 = arith.constant 0 : index
    %4 = vector.load %arg3[%c0_1, %c0_2, %c0_3] : memref<2x8x32xf32, #tpu.memory_space<vmem>>, vector<2x8x32xf32>
    %5 = tpu.concatenate %3, %4 in 2 : vector<2x8x32xf32>, vector<2x8x32xf32> -> vector<2x8x64xf32>
    %6 = vector.shape_cast %5 : vector<2x8x64xf32> to vector<2x512xf32>
    %c0_4 = arith.constant 0 : index
    %c0_5 = arith.constant 0 : index
    %7 = vector.load %arg4[%c0_4, %c0_5] : memref<2x512xf32, #tpu.memory_space<vmem>>, vector<2x512xf32>
    tpu.vector_store %arg4[%c0_4, %c0_5], %6 {strides = array<i32>} : memref<2x512xf32, #tpu.memory_space<vmem>>, vector<2x512xf32>,
    return
  }
  func.func @transform_0(%arg0: i32, %arg1: i32) -> (i32, i32) {
    %c0_i32 = arith.constant 0 : i32
    %c0_i32_0 = arith.constant 0 : i32
    return %arg0, %c0_i32 : i32, i32
  }
  func.func @transform_1(%arg0: i32, %arg1: i32) -> (i32, i32, i32) {
    %c0_i32 = arith.constant 0 : i32
    %c0_i32_0 = arith.constant 0 : i32
    return %arg0, %arg1, %c0_i32 : i32, i32, i32
  }
  func.func @transform_2(%arg0: i32, %arg1: i32) -> (i32, i32) {
    %c0_i32 = arith.constant 0 : i32
    return %arg0, %arg1 : i32, i32
  }
}

module attributes {stable_mosaic.version = 11 : i64} {
  func.func @_concat_kernel_flat(%arg0: i32, %arg1: i32, %arg2: memref<2x32xf32, #tpu.memory_space<vmem>>, %arg3: memref<2x8x32xf32, #tpu.memory_space<vmem>>, %arg4: memref<2x512xf32, #tpu.memory_space<vmem>>) attributes {dimension_semantics = [#tpu.dimension_semantics<parallel>, #tpu.dimension_semantics<arbitrary>], iteration_bounds = array<i64: 1, 1>, scalar_prefetch = 0 : i64, scratch_operands = 0 : i64, tpu.core_type = #tpu.core_type<tc>, window_params = [{transform_indices = @transform_0, window_bounds = array<i64: 2, 32>}, {transform_indices = @transform_1, window_bounds = array<i64: 2, 8, 32>}, {transform_indices = @transform_2, window_bounds = array<i64: 2, 512>}]} {
    %c0 = arith.constant 0 : index
    %c0_0 = arith.constant 0 : index
    %0 = vector.load %arg2[%c0, %c0_0] : memref<2x32xf32, #tpu.memory_space<vmem>>, vector<2x32xf32>
    %1 = vector.shape_cast %0 : vector<2x32xf32> to vector<2x1x32xf32>
    %2 = vector.shape_cast %1 : vector<2x1x32xf32> to vector<2x1x32xf32>
    %3 = vector.broadcast %2 : vector<2x1x32xf32> to vector<2x8x32xf32>
    %c0_1 = arith.constant 0 : index
    %c0_2 = arith.constant 0 : index
    %c0_3 = arith.constant 0 : index
    %4 = vector.load %arg3[%c0_1, %c0_2, %c0_3] : memref<2x8x32xf32, #tpu.memory_space<vmem>>, vector<2x8x32xf32>
    %5 = tpu.concatenate %3, %4 in 2 : vector<2x8x32xf32>, vector<2x8x32xf32> -> vector<2x8x64xf32>
    %6 = vector.shape_cast %5 : vector<2x8x64xf32> to vector<2x512xf32>
    %c0_4 = arith.constant 0 : index
    %c0_5 = arith.constant 0 : index
    %7 = vector.load %arg4[%c0_4, %c0_5] : memref<2x512xf32, #tpu.memory_space<vmem>>, vector<2x512xf32>
    tpu.vector_store %arg4[%c0_4, %c0_5], %6 {strides = array<i32>} : memref<2x512xf32, #tpu.memory_space<vmem>>, vector<2x512xf32>,
    return
  }
  func.func @transform_0(%arg0: i32, %arg1: i32) -> (i32, i32) {
    %c0_i32 = arith.constant 0 : i32
    %c0_i32_0 = arith.constant 0 : i32
    return %arg0, %c0_i32 : i32, i32
  }
  func.func @transform_1(%arg0: i32, %arg1: i32) -> (i32, i32, i32) {
    %c0_i32 = arith.constant 0 : i32
    %c0_i32_0 = arith.constant 0 : i32
    return %arg0, %arg1, %c0_i32 : i32, i32, i32
  }
  func.func @transform_2(%arg0: i32, %arg1: i32) -> (i32, i32) {
    %c0_i32 = arith.constant 0 : i32
    return %arg0, %arg1 : i32, i32
  }
}

module attributes {stable_mosaic.version = 11 : i64} {
  func.func @_concat_kernel_3d(%arg0: i32, %arg1: i32, %arg2: memref<2x32xf32, #tpu.memory_space<vmem>>, %arg3: memref<2x8x32xf32, #tpu.memory_space<vmem>>, %arg4: memref<2x8x64xf32, #tpu.memory_space<vmem>>) attributes {dimension_semantics = [#tpu.dimension_semantics<core_parallel>, #tpu.dimension_semantics<arbitrary>], iteration_bounds = array<i64: 1, 1>, scalar_prefetch = 0 : i64, scratch_operands = 0 : i64, tpu.core_type = #tpu.core_type<tc>, window_params = [{transform_indices = @transform_0, window_bounds = array<i64: 2, 32>}, {transform_indices = @transform_1, window_bounds = array<i64: 2, 8, 32>}, {transform_indices = @transform_2, window_bounds = array<i64: 2, 8, 64>}]} {
    %c0 = arith.constant 0 : index
    %c0_0 = arith.constant 0 : index
    %0 = vector.load %arg2[%c0, %c0_0] : memref<2x32xf32, #tpu.memory_space<vmem>>, vector<2x32xf32>
    %1 = vector.shape_cast %0 : vector<2x32xf32> to vector<2x1x32xf32>
    %2 = vector.shape_cast %1 : vector<2x1x32xf32> to vector<2x1x32xf32>
    %3 = vector.broadcast %2 : vector<2x1x32xf32> to vector<2x8x32xf32>
    %c0_1 = arith.constant 0 : index
    %c0_2 = arith.constant 0 : index
    %c0_3 = arith.constant 0 : index
    %4 = vector.load %arg3[%c0_1, %c0_2, %c0_3] : memref<2x8x32xf32, #tpu.memory_space<vmem>>, vector<2x8x32xf32>
    %5 = tpu.concatenate %3, %4 in 2 : vector<2x8x32xf32>, vector<2x8x32xf32> -> vector<2x8x64xf32>
    %c0_4 = arith.constant 0 : index
    %c0_5 = arith.constant 0 : index
    %c0_6 = arith.constant 0 : index
    %6 = vector.load %arg4[%c0_4, %c0_5, %c0_6] : memref<2x8x64xf32, #tpu.memory_space<vmem>>, vector<2x8x64xf32>
    tpu.vector_store %arg4[%c0_4, %c0_5, %c0_6], %5 {strides = array<i32>} : memref<2x8x64xf32, #tpu.memory_space<vmem>>, vector<2x8x64xf32>,
    return
  }
  func.func @transform_0(%arg0: i32, %arg1: i32) -> (i32, i32) {
    %c0_i32 = arith.constant 0 : i32
    %c0_i32_0 = arith.constant 0 : i32
    return %arg0, %c0_i32 : i32, i32
  }
  func.func @transform_1(%arg0: i32, %arg1: i32) -> (i32, i32, i32) {
    %c0_i32 = arith.constant 0 : i32
    %c0_i32_0 = arith.constant 0 : i32
    return %arg0, %arg1, %c0_i32 : i32, i32, i32
  }
  func.func @transform_2(%arg0: i32, %arg1: i32) -> (i32, i32, i32) {
    %c0_i32 = arith.constant 0 : i32
    %c0_i32_0 = arith.constant 0 : i32
    return %arg0, %arg1, %c0_i32 : i32, i32, i32
  }
}

module attributes {stable_mosaic.version = 11 : i64} {
  func.func @_concat_kernel_3d(%arg0: i32, %arg1: i32, %arg2: memref<2x32xf32, #tpu.memory_space<vmem>>, %arg3: memref<2x8x32xf32, #tpu.memory_space<vmem>>, %arg4: memref<2x8x64xf32, #tpu.memory_space<vmem>>) attributes {dimension_semantics = [#tpu.dimension_semantics<parallel>, #tpu.dimension_semantics<arbitrary>], iteration_bounds = array<i64: 1, 1>, scalar_prefetch = 0 : i64, scratch_operands = 0 : i64, tpu.core_type = #tpu.core_type<tc>, window_params = [{transform_indices = @transform_0, window_bounds = array<i64: 2, 32>}, {transform_indices = @transform_1, window_bounds = array<i64: 2, 8, 32>}, {transform_indices = @transform_2, window_bounds = array<i64: 2, 8, 64>}]} {
    %c0 = arith.constant 0 : index
    %c0_0 = arith.constant 0 : index
    %0 = vector.load %arg2[%c0, %c0_0] : memref<2x32xf32, #tpu.memory_space<vmem>>, vector<2x32xf32>
    %1 = vector.shape_cast %0 : vector<2x32xf32> to vector<2x1x32xf32>
    %2 = vector.shape_cast %1 : vector<2x1x32xf32> to vector<2x1x32xf32>
    %3 = vector.broadcast %2 : vector<2x1x32xf32> to vector<2x8x32xf32>
    %c0_1 = arith.constant 0 : index
    %c0_2 = arith.constant 0 : index
    %c0_3 = arith.constant 0 : index
    %4 = vector.load %arg3[%c0_1, %c0_2, %c0_3] : memref<2x8x32xf32, #tpu.memory_space<vmem>>, vector<2x8x32xf32>
    %5 = tpu.concatenate %3, %4 in 2 : vector<2x8x32xf32>, vector<2x8x32xf32> -> vector<2x8x64xf32>
    %c0_4 = arith.constant 0 : index
    %c0_5 = arith.constant 0 : index
    %c0_6 = arith.constant 0 : index
    %6 = vector.load %arg4[%c0_4, %c0_5, %c0_6] : memref<2x8x64xf32, #tpu.memory_space<vmem>>, vector<2x8x64xf32>
    tpu.vector_store %arg4[%c0_4, %c0_5, %c0_6], %5 {strides = array<i32>} : memref<2x8x64xf32, #tpu.memory_space<vmem>>, vector<2x8x64xf32>,
    return
  }
  func.func @transform_0(%arg0: i32, %arg1: i32) -> (i32, i32) {
    %c0_i32 = arith.constant 0 : i32
    %c0_i32_0 = arith.constant 0 : i32
    return %arg0, %c0_i32 : i32, i32
  }
  func.func @transform_1(%arg0: i32, %arg1: i32) -> (i32, i32, i32) {
    %c0_i32 = arith.constant 0 : i32
    %c0_i32_0 = arith.constant 0 : i32
    return %arg0, %arg1, %c0_i32 : i32, i32, i32
  }
  func.func @transform_2(%arg0: i32, %arg1: i32) -> (i32, i32, i32) {
    %c0_i32 = arith.constant 0 : i32
    %c0_i32_0 = arith.constant 0 : i32
    return %arg0, %arg1, %c0_i32 : i32, i32, i32
  }
}

</mosaic_0001>

<bundles_post_ra>
// kernel: tpu_custom_call.1
= control target key start
LH: loop header
LB: loop body
LE: loop exit
PB: predicated region body
PF: predicated region fallthrough
CT: control target
= control target key end

     0   :  { %s302_s9 = sld [smem:[#allocation0]]   ;;  %s341_s0 = inlined_call_operand.hbm [shape: f32[2,32], index: 0, kind: input, shape index: {}]   ;;  %s342_s1 = inlined_call_operand.hbm [shape: f32[2,8,32], index: 1, kind: input, shape index: {}]   ;;  %s343_s2 = inlined_call_operand.hbm [shape: f32[2,512], index: 2, kind: output, shape index: {}]  }
   0x1   :  { %7 = vsyncpa [#allocation3], 0 }
   0x2   :  { %8 = vsyncpa [#allocation6], 0 }
   0x3   :  { %9 = vsyncpa [#allocation4], 0  ;;  %s278_s14 = smov [#allocation2]   ;;  %s204_s22 = scalar_lea.hbm %s341_s0, 2 }
   0x4   :  { %s19_s15 = sshll.u32 %s278_s14, 4  ;;  %s20_s15 = int_to_ptr.vmem [resolvable:$true] %s19_s15 }
   0x6   :  { %s184_s10 = sshll.u32 %s302_s9, 1  ;;  %s189_s17 = sshll.u32 %s302_s9, 4 }
   0x7   :  { %s15_s13 = scalar_lea.hbm %s341_s0, %s184_s10 }
   0x8   :  { %s17_s16 = sshll.u32 %s15_s13, 4  ;;  %s18_s16 = int_to_ptr.hbm [resolvable:$true] %s17_s16 }
   0x9   :  { %s200_s18 = sshra.s32 %s18_s16, 4  ;;  %s201_s18 = int_to_ptr.hbm [resolvable:$true] %s200_s18 }
   0xa   :  { %s202_s19 = scalar_lea.hbm %s201_s18, 2 }
   0xb   :  { %p203_p0 = scmp.ne.s32.totalorder %s201_s18, %s202_s19  ;;  %p206_p1 = scmp.lt.s32.totalorder %s204_s22, %s202_s19 }
   0xd   :  { %p208_p2 = pnand %p206_p1, %p203_p0 }
   0xf   :  { %211 = shalt.err (!%p208_p2)
}
  0x10   :  { %22 = dma.hbm_to_vmem [thread:$0]  %s18_s16, 32, %s20_s15, [#allocation3]  }
  0x11   :  { %s29_s25 = scalar_lea.hbm %s342_s1, %s189_s17  ;;  %s279_s27 = smov [#allocation5]  }
  0x12   :  { %s30_s26 = sshll.u32 %s29_s25, 4  ;;  %s32_s28 = sshll.u32 %s279_s27, 4  ;;  %s31_s26 = int_to_ptr.hbm [resolvable:$true] %s30_s26  ;;  %s33_s28 = int_to_ptr.vmem [resolvable:$true] %s32_s28 }
  0x13   :  { %s224_s29 = sshra.s32 %s31_s26, 4  ;;  %s228_s0 = scalar_lea.hbm %s342_s1, 16  ;;  %s225_s29 = int_to_ptr.hbm [resolvable:$true] %s224_s29 }
  0x14   :  { %s226_s30 = scalar_lea.hbm %s225_s29, 16 }
  0x15   :  { %p227_p3 = scmp.ne.s32.totalorder %s225_s29, %s226_s30  ;;  %p230_p4 = scmp.lt.s32.totalorder %s228_s0, %s226_s30 }
  0x17   :  { %p232_p5 = pnand %p230_p4, %p227_p3 }
  0x19   :  { %235 = shalt.err (!%p232_p5)
}
  0x1a   :  { %s280_s5 = smov 128   ;;  %s281_s6 = smov 8  }
  0x1b   :  { %38 = dma.hbm_to_vmem [thread:$0]  %s31_s26, 256, %s33_s28, [#allocation6], %s280_s5, %s280_s5, %s281_s6  }
  0x1c   :  { %272 = dma.done.wait [#allocation3], 32  }
  0x1d   :  { %273 = vsyncadd [#allocation3], 4294967264 }
  0x1e   :  { %274 = dma.done.wait [#allocation6], 256  }
  0x1f   :  { %275 = vsyncadd [#allocation6], 4294967040  ;;  %v55_v0 = vld [vmem:[#allocation5] sm:$0xff]  ;;  %s282_s7 = smov 32   ;;  %v56_v1 = vld [vmem:[#allocation5 + $0x8] sm:$0xff]  ;;  %vm65_vm0 = vcmask 261120  }
  0x20   :  { %59 = vrot.lane.b32.xlu0 %v55_v0, %s282_s7  ;;  %v48_v2 = vld [vmem:[#allocation2] sm:$0x3]  ;;  %v283_v4 = vmov 1983009808   ;;  %vm69_vm1 = vcmask 1047556   ;;  %s285_s1 = smov 64  }
  0x21   :  { %v51_v3 = vperm.slane %v48_v2, 0  ;;  %v72_v5 = vunpack.c.l.s4 %v283_v4  ;;  %v50_v8 = vrot.slane %v48_v2, 1  ;;  %v284_v12 = vmov 1934713408   ;;  %s190_s8 = sshll.u32 %s302_s9, 3  ;;  %s286_s13 = smov [#allocation7]  }
  0x22   :  { %v94_v13 = vunpack.c.l.s4 %v284_v12  ;;  %vm137_vm2 = vcmask 523264   ;;  %s163_s12 = scalar_lea.hbm %s343_s2, %s190_s8  ;;  %vm149_vm3 = vcmask 1041408   ;;  %vm151_vm4 = vcmask 1045508   ;;  %s165_s14 = sshll.u32 %s286_s13, 4  ;;  %s166_s14 = int_to_ptr.vmem [resolvable:$true] %s165_s14 }
  0x23   :  { %v73_v9 = vunpack.c.0.s8 %v72_v5  ;;  %v52_v11 = vperm.slane %v50_v8, 0  ;;  %s167_s15 = sshll.u32 %s163_s12, 4  ;;  %vm153_vm5 = vcmask 1043456   ;;  %s264_s19 = scalar_lea.hbm %s343_s2, 8  ;;  %s168_s15 = int_to_ptr.hbm [resolvable:$true] %s167_s15 }
  0x24   :  { %v95_v19 = vunpack.c.0.s8 %v94_v13  ;;  %s260_s9 = sshra.s32 %s168_s15, 4  ;;  %s261_s9 = int_to_ptr.hbm [resolvable:$true] %s260_s9 }
  0x25   :  { %s262_s16 = scalar_lea.hbm %s261_s9, 8 }
  0x26   :  { %p263_p6 = scmp.ne.s32.totalorder %s261_s9, %s262_s16  ;;  %p266_p7 = scmp.lt.s32.totalorder %s264_s19, %s262_s16 }
  0x28   :  { %61 = vrot.lane.b32.xlu0 %v56_v1, %s282_s7  ;;  %p268_p8 = pnand %p266_p7, %p263_p6 }
  0x92   :  { %v60_v6 = vpop.permute.xlu0 %59 }
  0x93   :  { %v66_v7 = vsel %vm65_vm0, %v51_v3, %v60_v6 }
  0x94   :  { %v68_v10 = vrot.slane %v66_v7, 4  ;;  %v74_v15 = vperm.slane %v66_v7, %v73_v9 }
  0x96   :  { %v70_v14 = vsel %vm69_vm1, 0.0, %v68_v10  ;;  %v91_v20 = vrot.slane %v74_v15, 4 }
  0x97   :  { %v78_v17 = vperm.slane %v70_v14, %v73_v9 }
  0x99   :  { %v103_v25 = vrot.slane %v78_v17, 4 }
  0x9a   :  { %v62_v16 = vpop.permute.xlu0 %61 }
  0x9b   :  { %v67_v18 = vsel %vm65_vm0, %v52_v11, %v62_v16 }
  0x9c   :  { %v79_v21 = vrot.slane %v67_v18, 4  ;;  %v84_v22 = vperm.slane %v67_v18, %v73_v9 }
  0x9e   :  { %v80_v23 = vsel %vm69_vm1, 0.0, %v79_v21  ;;  %v92_v24 = vsel %vm69_vm1, %v84_v22, %v91_v20  ;;  %v89_v27 = vrot.slane %v84_v22, 4 }
  0x9f   :  { %v88_v26 = vperm.slane %v80_v23, %v73_v9  ;;  %v100_v28 = vperm.slane %v92_v24, %v95_v19 }
  0xa0   :  { %v90_v35 = vsel %vm69_vm1, %v89_v27, %v74_v15 }
  0xa1   :  { %v101_v29 = vrot.slane %v88_v26, 4  ;;  %v115_v30 = vrot.slane %v100_v28, 4  ;;  %v104_v31 = vsel %vm69_vm1, %v88_v26, %v103_v25  ;;  %v96_v39 = vperm.slane %v90_v35, %v95_v19 }
  0xa2   :  { %v112_v32 = vperm.slane %v104_v31, %v95_v19 }
  0xa3   :  { %v116_v33 = vsel %vm69_vm1, 0.0, %v115_v30  ;;  %v102_v34 = vsel %vm69_vm1, %v101_v29, %v78_v17  ;;  %v113_v41 = vrot.slane %v96_v39, 4 }
  0xa4   :  { %126 = vrot.lane.b32.xlu1 %v116_v33, %s285_s1  ;;  %v119_v36 = vrot.slane %v112_v32, 4  ;;  %v108_v37 = vperm.slane %v102_v34, %v95_v19 }
  0xa5   :  { %v114_v43 = vsel %vm69_vm1, 0.0, %v113_v41 }
  0xa6   :  { %v120_v38 = vsel %vm69_vm1, 0.0, %v119_v36  ;;  %v117_v40 = vrot.slane %v108_v37, 4 }
  0xa7   :  { %134 = vrot.lane.b32.xlu2 %v120_v38, %s285_s1 }
  0xa8   :  { %v118_v42 = vsel %vm69_vm1, 0.0, %v117_v40 }
  0xac   :  { %130 = vrot.lane.b32.xlu1 %v118_v42, %s285_s1 }
  0xaf   :  { %122 = vrot.lane.b32.xlu2 %v114_v43, %s285_s1 }
 0x101   :  { %v135_v44 = vpop.permute.xlu2 %134 }
 0x102   :  { %v141_v47 = vsel %vm137_vm2, %v112_v32, %v135_v44 }
 0x103   :  { %v148_v52 = vrot.slane %v141_v47, 2 }
 0x109   :  { %v123_v48 = vpop.permute.xlu2 %122 }
 0x10a   :  { %v138_v54 = vsel %vm137_vm2, %v96_v39, %v123_v48 }
 0x116   :  { %v127_v45 = vpop.permute.xlu1 %126 }
 0x117   :  { %v139_v46 = vsel %vm137_vm2, %v100_v28, %v127_v45 }
 0x118   :  { %v146_v49 = vrot.slane %v139_v46, 6 }
 0x11a   :  { %v150_v55 = vsel %vm149_vm3, %v138_v54, %v146_v49 }
 0x11e   :  { %v131_v50 = vpop.permute.xlu1 %130 }
 0x11f   :  { %v140_v51 = vsel %vm137_vm2, %v108_v37, %v131_v50 }
 0x120   :  { %v147_v53 = vrot.slane %v140_v51, 4 }
 0x122   :  { %v152_v56 = vsel %vm151_vm4, %v147_v53, %v148_v52 }
 0x123   :  { %v154_v57 = vsel %vm153_vm5, %v150_v55, %v152_v56 }
 0x124   :  { %156 = vst [vmem:[#allocation7] sm:$0xff] %v154_v57 }
 0x125   :  { %271 = shalt.err (!%p268_p8)
}
 0x126   :  { %170 = dma.vmem_to_hbm [thread:$0]  %s166_s14, 128, %s168_s15, [#allocation4]  }
 0x127   :  { %276 = dma.done.wait [#allocation4], 128  }
 0x128   :  { %277 = vsyncadd [#allocation4], 4294967168 }
 0x129   :  { %175 = vsyncpa [#allocation3], 1 }
 0x12a   :  { %176 = vsyncpa [#allocation6], 1 }
 0x12b   :  { %177 = vsyncpa [#allocation4], 1 }

// kernel: tpu_custom_call.1
= control target key start
LH: loop header
LB: loop body
LE: loop exit
PB: predicated region body
PF: predicated region fallthrough
CT: control target
= control target key end

     0   :  { %7 = vsyncpa [#allocation3], 0  ;;  %s301_s0 = inlined_call_operand.hbm [shape: f32[2,32], index: 0, kind: input, shape index: {}]   ;;  %s302_s1 = inlined_call_operand.hbm [shape: f32[2,8,32], index: 1, kind: input, shape index: {}]   ;;  %s303_s2 = inlined_call_operand.hbm [shape: f32[2,512], index: 2, kind: output, shape index: {}]  }
   0x1   :  { %8 = vsyncpa [#allocation6], 0 }
   0x2   :  { %9 = vsyncpa [#allocation4], 0  ;;  %s15_s11 = sshll.u32 %s301_s0, 4  ;;  %s256_s12 = smov [#allocation2]   ;;  %s16_s11 = int_to_ptr.hbm [resolvable:$true] %s15_s11 }
   0x3   :  { %s17_s13 = sshll.u32 %s256_s12, 4  ;;  %s25_s16 = sshll.u32 %s302_s1, 4  ;;  %s18_s13 = int_to_ptr.vmem [resolvable:$true] %s17_s13  ;;  %s26_s16 = int_to_ptr.hbm [resolvable:$true] %s25_s16 }
   0x4   :  { %20 = dma.hbm_to_vmem [thread:$0]  %s16_s11, 32, %s18_s13, [#allocation3]  }
   0x5   :  { %s257_s17 = smov [#allocation5]   ;;  %s258_s19 = smov 128  }
   0x6   :  { %s27_s18 = sshll.u32 %s257_s17, 4  ;;  %s259_s20 = smov 8   ;;  %s28_s18 = int_to_ptr.vmem [resolvable:$true] %s27_s18 }
   0x7   :  { %33 = dma.hbm_to_vmem [thread:$0]  %s26_s16, 256, %s28_s18, [#allocation6], %s258_s19, %s258_s19, %s259_s20  }
   0x8   :  { %250 = dma.done.wait [#allocation3], 32  }
   0x9   :  { %251 = vsyncadd [#allocation3], 4294967264 }
   0xa   :  { %252 = dma.done.wait [#allocation6], 256  }
   0xb   :  { %253 = vsyncadd [#allocation6], 4294967040  ;;  %v49_v0 = vld [vmem:[#allocation5] sm:$0xff]  ;;  %s260_s0 = smov 32   ;;  %v50_v1 = vld [vmem:[#allocation5 + $0x8] sm:$0xff]  ;;  %vm59_vm0 = vcmask 261120  }
   0xc   :  { %53 = vrot.lane.b32.xlu0 %v49_v0, %s260_s0  ;;  %v42_v2 = vld [vmem:[#allocation2] sm:$0x3]  ;;  %v261_v4 = vmov 1983009808   ;;  %vm63_vm1 = vcmask 1047556   ;;  %s263_s1 = smov 64  }
   0xd   :  { %v45_v3 = vperm.slane %v42_v2, 0  ;;  %v66_v5 = vunpack.c.l.s4 %v261_v4  ;;  %v44_v8 = vrot.slane %v42_v2, 1  ;;  %v262_v12 = vmov 1934713408   ;;  %s264_s21 = smov [#allocation7]   ;;  %s158_s25 = sshll.u32 %s303_s2, 4  ;;  %s159_s25 = int_to_ptr.hbm [resolvable:$true] %s158_s25 }
   0xe   :  { %v88_v13 = vunpack.c.l.s4 %v262_v12  ;;  %vm131_vm2 = vcmask 523264   ;;  %vm143_vm3 = vcmask 1041408   ;;  %vm145_vm4 = vcmask 1045508   ;;  %s156_s22 = sshll.u32 %s264_s21, 4  ;;  %s157_s22 = int_to_ptr.vmem [resolvable:$true] %s156_s22 }
   0xf   :  { %v67_v9 = vunpack.c.0.s8 %v66_v5  ;;  %v46_v11 = vperm.slane %v44_v8, 0  ;;  %vm147_vm5 = vcmask 1043456  }
  0x10   :  { %v89_v19 = vunpack.c.0.s8 %v88_v13 }
  0x14   :  { %55 = vrot.lane.b32.xlu0 %v50_v1, %s260_s0 }
  0x7e   :  { %v54_v6 = vpop.permute.xlu0 %53 }
  0x7f   :  { %v60_v7 = vsel %vm59_vm0, %v45_v3, %v54_v6 }
  0x80   :  { %v62_v10 = vrot.slane %v60_v7, 4  ;;  %v68_v15 = vperm.slane %v60_v7, %v67_v9 }
  0x82   :  { %v64_v14 = vsel %vm63_vm1, 0.0, %v62_v10  ;;  %v85_v20 = vrot.slane %v68_v15, 4 }
  0x83   :  { %v72_v17 = vperm.slane %v64_v14, %v67_v9 }
  0x85   :  { %v97_v25 = vrot.slane %v72_v17, 4 }
  0x86   :  { %v56_v16 = vpop.permute.xlu0 %55 }
  0x87   :  { %v61_v18 = vsel %vm59_vm0, %v46_v11, %v56_v16 }
  0x88   :  { %v73_v21 = vrot.slane %v61_v18, 4  ;;  %v78_v22 = vperm.slane %v61_v18, %v67_v9 }
  0x8a   :  { %v74_v23 = vsel %vm63_vm1, 0.0, %v73_v21  ;;  %v86_v24 = vsel %vm63_vm1, %v78_v22, %v85_v20  ;;  %v83_v27 = vrot.slane %v78_v22, 4 }
  0x8b   :  { %v82_v26 = vperm.slane %v74_v23, %v67_v9  ;;  %v94_v28 = vperm.slane %v86_v24, %v89_v19 }
  0x8c   :  { %v84_v35 = vsel %vm63_vm1, %v83_v27, %v68_v15 }
  0x8d   :  { %v95_v29 = vrot.slane %v82_v26, 4  ;;  %v109_v30 = vrot.slane %v94_v28, 4  ;;  %v98_v31 = vsel %vm63_vm1, %v82_v26, %v97_v25  ;;  %v90_v39 = vperm.slane %v84_v35, %v89_v19 }
  0x8e   :  { %v106_v32 = vperm.slane %v98_v31, %v89_v19 }
  0x8f   :  { %v110_v33 = vsel %vm63_vm1, 0.0, %v109_v30  ;;  %v96_v34 = vsel %vm63_vm1, %v95_v29, %v72_v17  ;;  %v107_v41 = vrot.slane %v90_v39, 4 }
  0x90   :  { %120 = vrot.lane.b32.xlu1 %v110_v33, %s263_s1  ;;  %v113_v36 = vrot.slane %v106_v32, 4  ;;  %v102_v37 = vperm.slane %v96_v34, %v89_v19 }
  0x91   :  { %v108_v43 = vsel %vm63_vm1, 0.0, %v107_v41 }
  0x92   :  { %v114_v38 = vsel %vm63_vm1, 0.0, %v113_v36  ;;  %v111_v40 = vrot.slane %v102_v37, 4 }
  0x93   :  { %128 = vrot.lane.b32.xlu2 %v114_v38, %s263_s1 }
  0x94   :  { %v112_v42 = vsel %vm63_vm1, 0.0, %v111_v40 }
  0x98   :  { %124 = vrot.lane.b32.xlu1 %v112_v42, %s263_s1 }
  0x9b   :  { %116 = vrot.lane.b32.xlu2 %v108_v43, %s263_s1 }
  0xed   :  { %v129_v44 = vpop.permute.xlu2 %128 }
  0xee   :  { %v135_v47 = vsel %vm131_vm2, %v106_v32, %v129_v44 }
  0xef   :  { %v142_v52 = vrot.slane %v135_v47, 2 }
  0xf5   :  { %v117_v48 = vpop.permute.xlu2 %116 }
  0xf6   :  { %v132_v54 = vsel %vm131_vm2, %v90_v39, %v117_v48 }
 0x102   :  { %v121_v45 = vpop.permute.xlu1 %120 }
 0x103   :  { %v133_v46 = vsel %vm131_vm2, %v94_v28, %v121_v45 }
 0x104   :  { %v140_v49 = vrot.slane %v133_v46, 6 }
 0x106   :  { %v144_v55 = vsel %vm143_vm3, %v132_v54, %v140_v49 }
 0x10a   :  { %v125_v50 = vpop.permute.xlu1 %124 }
 0x10b   :  { %v134_v51 = vsel %vm131_vm2, %v102_v37, %v125_v50 }
 0x10c   :  { %v141_v53 = vrot.slane %v134_v51, 4 }
 0x10e   :  { %v146_v56 = vsel %vm145_vm4, %v141_v53, %v142_v52 }
 0x10f   :  { %v148_v57 = vsel %vm147_vm5, %v144_v55, %v146_v56 }
 0x110   :  { %150 = vst [vmem:[#allocation7] sm:$0xff] %v148_v57 }
 0x111   :  { %161 = dma.vmem_to_hbm [thread:$0]  %s157_s22, 128, %s159_s25, [#allocation4]  }
 0x112   :  { %254 = dma.done.wait [#allocation4], 128  }
 0x113   :  { %255 = vsyncadd [#allocation4], 4294967168 }
 0x114   :  { %166 = vsyncpa [#allocation3], 1 }
 0x115   :  { %167 = vsyncpa [#allocation6], 1 }
 0x116   :  { %168 = vsyncpa [#allocation4], 1 }

// kernel: tpu_custom_call.1
= control target key start
LH: loop header
LB: loop body
LE: loop exit
PB: predicated region body
PF: predicated region fallthrough
CT: control target
= control target key end

     0   :  { %s213_s9 = sld [smem:[#allocation0]]   ;;  %s245_s0 = inlined_call_operand.hbm [shape: f32[2,32], index: 0, kind: input, shape index: {}]   ;;  %s246_s1 = inlined_call_operand.hbm [shape: f32[2,8,32], index: 1, kind: input, shape index: {}]   ;;  %s247_s2 = inlined_call_operand.hbm [shape: f32[2,8,64], index: 2, kind: output, shape index: {}]  }
   0x1   :  { %7 = vsyncpa [#allocation3], 0 }
   0x2   :  { %8 = vsyncpa [#allocation6], 0 }
   0x3   :  { %9 = vsyncpa [#allocation4], 0  ;;  %s192_s14 = smov [#allocation2]   ;;  %s118_s22 = scalar_lea.hbm %s245_s0, 2 }
   0x4   :  { %s19_s15 = sshll.u32 %s192_s14, 4  ;;  %s20_s15 = int_to_ptr.vmem [resolvable:$true] %s19_s15 }
   0x6   :  { %s101_s10 = sshll.u32 %s213_s9, 1  ;;  %s106_s17 = sshll.u32 %s213_s9, 4 }
   0x7   :  { %s15_s13 = scalar_lea.hbm %s245_s0, %s101_s10 }
   0x8   :  { %s17_s16 = sshll.u32 %s15_s13, 4  ;;  %s18_s16 = int_to_ptr.hbm [resolvable:$true] %s17_s16 }
   0x9   :  { %s114_s18 = sshra.s32 %s18_s16, 4  ;;  %s115_s18 = int_to_ptr.hbm [resolvable:$true] %s114_s18 }
   0xa   :  { %s116_s19 = scalar_lea.hbm %s115_s18, 2 }
   0xb   :  { %p117_p0 = scmp.ne.s32.totalorder %s115_s18, %s116_s19  ;;  %p120_p1 = scmp.lt.s32.totalorder %s118_s22, %s116_s19 }
   0xd   :  { %p122_p2 = pnand %p120_p1, %p117_p0 }
   0xf   :  { %125 = shalt.err (!%p122_p2)
}
  0x10   :  { %22 = dma.hbm_to_vmem [thread:$0]  %s18_s16, 32, %s20_s15, [#allocation3]  }
  0x11   :  { %s29_s25 = scalar_lea.hbm %s246_s1, %s106_s17  ;;  %s193_s27 = smov [#allocation5]  }
  0x12   :  { %s30_s26 = sshll.u32 %s29_s25, 4  ;;  %s32_s28 = sshll.u32 %s193_s27, 4  ;;  %s31_s26 = int_to_ptr.hbm [resolvable:$true] %s30_s26  ;;  %s33_s28 = int_to_ptr.vmem [resolvable:$true] %s32_s28 }
  0x13   :  { %s138_s29 = sshra.s32 %s31_s26, 4  ;;  %s142_s4 = scalar_lea.hbm %s246_s1, 16  ;;  %s139_s29 = int_to_ptr.hbm [resolvable:$true] %s138_s29 }
  0x14   :  { %s140_s30 = scalar_lea.hbm %s139_s29, 16 }
  0x15   :  { %p141_p3 = scmp.ne.s32.totalorder %s139_s29, %s140_s30  ;;  %p144_p4 = scmp.lt.s32.totalorder %s142_s4, %s140_s30 }
  0x17   :  { %p146_p5 = pnand %p144_p4, %p141_p3 }
  0x19   :  { %149 = shalt.err (!%p146_p5)
}
  0x1a   :  { %s194_s5 = smov 128   ;;  %s195_s6 = smov 8  }
  0x1b   :  { %38 = dma.hbm_to_vmem [thread:$0]  %s31_s26, 256, %s33_s28, [#allocation6], %s194_s5, %s194_s5, %s195_s6  }
  0x1c   :  { %186 = dma.done.wait [#allocation3], 32  }
  0x1d   :  { %187 = vsyncadd [#allocation3], 4294967264 }
  0x1e   :  { %188 = dma.done.wait [#allocation6], 256  }
  0x1f   :  { %189 = vsyncadd [#allocation6], 4294967040  ;;  %v56_v0 = vld [vmem:[#allocation5] sm:$0xff]  ;;  %s196_s7 = smov 32   ;;  %v57_v1 = vld [vmem:[#allocation5 + $0x8] sm:$0xff]  ;;  %vm66_vm0 = vcmask 261120   ;;  %s78_s10 = scalar_lea.hbm %s247_s2, %s106_s17 }
  0x20   :  { %60 = vrot.lane.b32.xlu0 %v56_v0, %s196_s7  ;;  %v49_v2 = vld [vmem:[#allocation2] sm:$0x3]  ;;  %vm69_vm1 = vcmask 523264   ;;  %s197_s11 = smov [#allocation7]   ;;  %s81_s13 = sshll.u32 %s78_s10, 4  ;;  %s82_s13 = int_to_ptr.hbm [resolvable:$true] %s81_s13 }
  0x21   :  { %v52_v3 = vperm.slane %v49_v2, 0  ;;  %v51_v6 = vrot.slane %v49_v2, 1  ;;  %s79_s12 = sshll.u32 %s197_s11, 4  ;;  %s174_s14 = sshra.s32 %s82_s13, 4  ;;  %s80_s12 = int_to_ptr.vmem [resolvable:$true] %s79_s12  ;;  %s175_s14 = int_to_ptr.hbm [resolvable:$true] %s174_s14 }
  0x22   :  { %s176_s15 = scalar_lea.hbm %s175_s14, 16  ;;  %s178_s9 = scalar_lea.hbm %s247_s2, 16 }
  0x23   :  { %v53_v7 = vperm.slane %v51_v6, 0  ;;  %p177_p6 = scmp.ne.s32.totalorder %s175_s14, %s176_s15  ;;  %p180_p7 = scmp.lt.s32.totalorder %s178_s9, %s176_s15 }
  0x25   :  { %p182_p8 = pnand %p180_p7, %p177_p6 }
  0x28   :  { %62 = vrot.lane.b32.xlu0 %v57_v1, %s196_s7 }
  0x92   :  { %v61_v4 = vpop.permute.xlu0 %60 }
  0x93   :  { %v67_v5 = vsel %vm66_vm0, %v52_v3, %v61_v4 }
  0x94   :  { %70 = vst.msk [vmem:[#allocation7] sm:$0xff] %vm69_vm1, %v67_v5 }
  0x9a   :  { %v63_v8 = vpop.permute.xlu0 %62 }
  0x9b   :  { %v68_v9 = vsel %vm66_vm0, %v53_v7, %v63_v8 }
  0x9c   :  { %71 = vst.msk [vmem:[#allocation7 + $0x8] sm:$0xff] %vm69_vm1, %v68_v9 }
  0x9d   :  { %185 = shalt.err (!%p182_p8)
}
  0x9e   :  { %87 = dma.vmem_to_hbm [thread:$0]  %s80_s12, 256, %s82_s13, [#allocation4], %s194_s5, %s194_s5, %s195_s6  }
  0x9f   :  { %190 = dma.done.wait [#allocation4], 256  }
  0xa0   :  { %191 = vsyncadd [#allocation4], 4294967040 }
  0xa1   :  { %92 = vsyncpa [#allocation3], 1 }
  0xa2   :  { %93 = vsyncpa [#allocation6], 1 }
  0xa3   :  { %94 = vsyncpa [#allocation4], 1 }

// kernel: tpu_custom_call.1
= control target key start
LH: loop header
LB: loop body
LE: loop exit
PB: predicated region body
PF: predicated region fallthrough
CT: control target
= control target key end

     0   :  { %7 = vsyncpa [#allocation3], 0  ;;  %s205_s0 = inlined_call_operand.hbm [shape: f32[2,32], index: 0, kind: input, shape index: {}]   ;;  %s206_s1 = inlined_call_operand.hbm [shape: f32[2,8,32], index: 1, kind: input, shape index: {}]   ;;  %s207_s2 = inlined_call_operand.hbm [shape: f32[2,8,64], index: 2, kind: output, shape index: {}]  }
   0x1   :  { %8 = vsyncpa [#allocation6], 0 }
   0x2   :  { %9 = vsyncpa [#allocation4], 0  ;;  %s15_s11 = sshll.u32 %s205_s0, 4  ;;  %s169_s12 = smov [#allocation2]   ;;  %s16_s11 = int_to_ptr.hbm [resolvable:$true] %s15_s11 }
   0x3   :  { %s17_s13 = sshll.u32 %s169_s12, 4  ;;  %s25_s16 = sshll.u32 %s206_s1, 4  ;;  %s18_s13 = int_to_ptr.vmem [resolvable:$true] %s17_s13  ;;  %s26_s16 = int_to_ptr.hbm [resolvable:$true] %s25_s16 }
   0x4   :  { %20 = dma.hbm_to_vmem [thread:$0]  %s16_s11, 32, %s18_s13, [#allocation3]  }
   0x5   :  { %s170_s17 = smov [#allocation5]   ;;  %s171_s19 = smov 128  }
   0x6   :  { %s27_s18 = sshll.u32 %s170_s17, 4  ;;  %s172_s20 = smov 8   ;;  %s28_s18 = int_to_ptr.vmem [resolvable:$true] %s27_s18 }
   0x7   :  { %33 = dma.hbm_to_vmem [thread:$0]  %s26_s16, 256, %s28_s18, [#allocation6], %s171_s19, %s171_s19, %s172_s20  }
   0x8   :  { %163 = dma.done.wait [#allocation3], 32  }
   0x9   :  { %164 = vsyncadd [#allocation3], 4294967264 }
   0xa   :  { %165 = dma.done.wait [#allocation6], 256  }
   0xb   :  { %166 = vsyncadd [#allocation6], 4294967040  ;;  %v49_v0 = vld [vmem:[#allocation5] sm:$0xff]  ;;  %s173_s0 = smov 32   ;;  %v50_v1 = vld [vmem:[#allocation5 + $0x8] sm:$0xff]  ;;  %vm59_vm0 = vcmask 261120  }
   0xc   :  { %53 = vrot.lane.b32.xlu0 %v49_v0, %s173_s0  ;;  %v42_v2 = vld [vmem:[#allocation2] sm:$0x3]  ;;  %vm62_vm1 = vcmask 523264   ;;  %s174_s1 = smov [#allocation7]   ;;  %s71_s24 = sshll.u32 %s207_s2, 4  ;;  %s72_s24 = int_to_ptr.hbm [resolvable:$true] %s71_s24 }
   0xd   :  { %v45_v3 = vperm.slane %v42_v2, 0  ;;  %v44_v6 = vrot.slane %v42_v2, 1  ;;  %s69_s21 = sshll.u32 %s174_s1, 4  ;;  %s70_s21 = int_to_ptr.vmem [resolvable:$true] %s69_s21 }
   0xf   :  { %v46_v7 = vperm.slane %v44_v6, 0 }
  0x14   :  { %55 = vrot.lane.b32.xlu0 %v50_v1, %s173_s0 }
  0x7e   :  { %v54_v4 = vpop.permute.xlu0 %53 }
  0x7f   :  { %v60_v5 = vsel %vm59_vm0, %v45_v3, %v54_v4 }
  0x80   :  { %63 = vst.msk [vmem:[#allocation7] sm:$0xff] %vm62_vm1, %v60_v5 }
  0x86   :  { %v56_v8 = vpop.permute.xlu0 %55 }
  0x87   :  { %v61_v9 = vsel %vm59_vm0, %v46_v7, %v56_v8 }
  0x88   :  { %64 = vst.msk [vmem:[#allocation7 + $0x8] sm:$0xff] %vm62_vm1, %v61_v9 }
  0x89   :  { %77 = dma.vmem_to_hbm [thread:$0]  %s70_s21, 256, %s72_s24, [#allocation4], %s171_s19, %s171_s19, %s172_s20  }
  0x8a   :  { %167 = dma.done.wait [#allocation4], 256  }
  0x8b   :  { %168 = vsyncadd [#allocation4], 4294967040 }
  0x8c   :  { %82 = vsyncpa [#allocation3], 1 }
  0x8d   :  { %83 = vsyncpa [#allocation6], 1 }
  0x8e   :  { %84 = vsyncpa [#allocation4], 1 }

</bundles_post_ra>
